<compile_context>
chip_gen: v7x
topology: tpu7x:2x2x1
jax: 0.10.0
libtpu: 0.0.40
codegen_flags: <defaults>
</compile_context>

<pallas_src>
import functools

import jax
import jax.numpy as jnp
from jax.experimental import pallas as pl
from jax.experimental.pallas import tpu as pltpu


def rochet_train_kernel(x_ref, u_ref, v_ref, out_ref, *, softmax_temp):
    x = x_ref[...]                     # (TB, I_pad)   items + "-1" payment col + 0-pad
    u = u_ref[...]                     # (I_pad, M_pad) allocs^T rows + payment row
    v = v_ref[...]                     # (M_pad, I_pad) allocs cols + payment col

    # eu[b, m] = sum_i allocs[m, i] * x[b, i] - payments[m]
    eu = jnp.dot(x, u, preferred_element_type=jnp.float32)     # (TB, M_pad)

    # Softmax over menus with temperature (padded menus underflow to weight 0).
    s = eu * softmax_temp
    m = jnp.max(s, axis=-1, keepdims=True)
    e = jnp.exp(s - m)
    denom = jnp.sum(e, axis=-1, keepdims=True)
    w = e * pl.reciprocal(denom, approx=True)                   # (TB, M_pad)

    # Fused lane-dense output: [chosen_alloc | chosen_payment | 0-pad]
    out_ref[...] = jnp.dot(w, v, preferred_element_type=jnp.float32)


def _round_up(a, b):
    return (a + b - 1) // b * b


def rochet_forward(x, alloc_param, payments, *, alloc_mag=1.0, softmax_temp=100.0):
    """Train-mode forward of RochetNet. Returns (chosen_alloc, chosen_payment)."""
    x = x.astype(jnp.float32)
    alloc_param = alloc_param.astype(jnp.float32)
    payments = payments.astype(jnp.float32)

    num_menus, items_p1 = alloc_param.shape
    num_items = items_p1 - 1
    batch = x.shape[0]
    m1 = num_menus + 1                       # +1 for the no-purchase menu

    # ---- grid-invariant parameter preprocessing (once per forward, tiny) ----
    allocs = 2.0 * alloc_mag * jax.nn.sigmoid(alloc_param) - alloc_mag
    allocs = allocs[:, :num_items]
    allocs = jnp.concatenate(
        [allocs, jnp.zeros((1, num_items), jnp.float32)], axis=0)       # (M+1, I)
    pays = jnp.concatenate([payments, jnp.zeros((1,), jnp.float32)])     # (M+1,)

    i_pad = _round_up(num_items + 1, 128)    # lane-padded feature dim (+payment col)
    m_pad = _round_up(m1, 128)               # lane-padded menu dim
    pay_col = num_items                      # column/row index carrying payments

    # U: (I_pad, M_pad) so eu = x_aug @ U (no transpose, no slicing in-kernel).
    # Padded menus get a huge payment -> softmax weight underflows to exactly 0.
    u = jnp.zeros((i_pad, m_pad), jnp.float32)
    u = u.at[:num_items, :m1].set(allocs.T)
    u = u.at[pay_col, :].set(
        jnp.concatenate([pays, jnp.full((m_pad - m1,), 1e9, jnp.float32)]))

    # V: (M_pad, I_pad) so out = w @ V = [chosen_alloc | chosen_payment | 0...].
    v = jnp.zeros((m_pad, i_pad), jnp.float32)
    v = v.at[:m1, :num_items].set(allocs)
    v = v.at[:m1, pay_col].set(pays)

    # ---- batch tiling ----
    tb = min(256, _round_up(batch, 8))
    b_pad = _round_up(batch, tb)
    x_aug = jnp.zeros((b_pad, i_pad), jnp.float32)
    x_aug = x_aug.at[:batch, :num_items].set(x)
    x_aug = x_aug.at[:batch, pay_col].set(-1.0)   # -1 * payment row -> "- payments[m]"

    grid = (b_pad // tb,)
    kernel = functools.partial(rochet_train_kernel, softmax_temp=softmax_temp)

    cost = pl.CostEstimate(
        flops=2 * b_pad * i_pad * m_pad + 2 * b_pad * m_pad * i_pad + 6 * b_pad * m_pad,
        transcendentals=b_pad * m_pad + b_pad,
        bytes_accessed=4 * (2 * b_pad * i_pad + i_pad * m_pad + m_pad * i_pad),
    )

    out = pl.pallas_call(
        kernel,
        out_shape=jax.ShapeDtypeStruct((b_pad, i_pad), jnp.float32),
        grid=grid,
        in_specs=[
            pl.BlockSpec((tb, i_pad), lambda i: (i, 0)),        # batch-tiled
            pl.BlockSpec((i_pad, m_pad), lambda i: (0, 0)),     # grid-invariant
            pl.BlockSpec((m_pad, i_pad), lambda i: (0, 0)),     # grid-invariant
        ],
        out_specs=pl.BlockSpec((tb, i_pad), lambda i: (i, 0)),
        compiler_params=pltpu.CompilerParams(
            dimension_semantics=("parallel",),
            vmem_limit_bytes=32 * 1024 * 1024),
        cost_estimate=cost,
    )(x_aug, u, v)

    chosen_alloc = out[:batch, :num_items]
    chosen_payment = out[:batch, pay_col]
    return chosen_alloc, chosen_payment


def rochet_forward_ref(x, alloc_param, payments, *, alloc_mag=1.0, softmax_temp=100.0):
    """Pure-JAX reference mirroring the PyTorch module (train=True)."""
    allocs = 2.0 * alloc_mag * jax.nn.sigmoid(alloc_param) - alloc_mag
    allocs = allocs[..., :-1]
    allocs = jnp.concatenate([allocs, jnp.zeros((1, allocs.shape[1]))], axis=0)
    pays = jnp.concatenate([payments, jnp.zeros((1,))])
    eu = jnp.sum(allocs[None, ...] * x[..., None, :], axis=-1) - pays[None, :]
    w = jax.nn.softmax(eu * softmax_temp, axis=-1)
    chosen_alloc = jnp.sum(w[..., :, None] * allocs[None, ...], axis=-2)
    chosen_payment = jnp.sum(w * pays[None, :], axis=-1)
    return chosen_alloc, chosen_payment


if __name__ == "__main__":
    num_items = 4
    num_menus = 15     # kernel sees num_menus + 1 = 16 real menus (incl. zero menu)

    key = jax.random.PRNGKey(0)
    k1, k2, k3, k4 = jax.random.split(key, 4)
    alloc_param = jax.random.uniform(k1, (num_menus, num_items + 1), jnp.float32)
    payments = jax.random.uniform(k2, (num_menus,), jnp.float32)

    # batch=8: single grid step; batch=300: exercises tiling (TB=256, 2 steps)
    # plus batch zero-padding and output slicing.
    for batch, kx in ((8, k3), (300, k4)):
        x = jax.random.uniform(kx, (batch, num_items), jnp.float32)

        chosen_alloc, chosen_payment = rochet_forward(x, alloc_param, payments)
        jax.block_until_ready((chosen_alloc, chosen_payment))

        ref_alloc, ref_payment = rochet_forward_ref(x, alloc_param, payments)
        assert chosen_alloc.shape == (batch, num_items)
        assert chosen_payment.shape == (batch,)
        assert jnp.allclose(chosen_alloc, ref_alloc, atol=2e-3, rtol=2e-3)
        assert jnp.allclose(chosen_payment, ref_payment, atol=2e-3, rtol=2e-3)

    print("KERNEL_OK")
</pallas_src>

<mosaic_0001>
module attributes {stable_mosaic.version = 11 : i64} {
  func.func @rochet_train_kernel(%arg0: i32, %arg1: memref<8x128xf32, #tpu.memory_space<vmem>>, %arg2: memref<128x128xf32, #tpu.memory_space<vmem>>, %arg3: memref<128x128xf32, #tpu.memory_space<vmem>>, %arg4: memref<8x128xf32, #tpu.memory_space<vmem>>) attributes {dimension_semantics = [#tpu.dimension_semantics<parallel>], iteration_bounds = array<i64: 1>, scalar_prefetch = 0 : i64, scratch_operands = 0 : i64, tpu.core_type = #tpu.core_type<tc>, window_params = [{transform_indices = @transform_0, window_bounds = array<i64: 8, 128>}, {pipeline_mode = #tpu.pipeline_mode<synchronous>, transform_indices = @transform_1, window_bounds = array<i64: 128, 128>}, {pipeline_mode = #tpu.pipeline_mode<synchronous>, transform_indices = @transform_2, window_bounds = array<i64: 128, 128>}, {transform_indices = @transform_3, window_bounds = array<i64: 8, 128>}]} {
    %c0 = arith.constant 0 : index
    %c0_0 = arith.constant 0 : index
    %0 = vector.load %arg1[%c0, %c0_0] : memref<8x128xf32, #tpu.memory_space<vmem>>, vector<8x128xf32>
    %c0_1 = arith.constant 0 : index
    %c0_2 = arith.constant 0 : index
    %1 = vector.load %arg2[%c0_1, %c0_2] : memref<128x128xf32, #tpu.memory_space<vmem>>, vector<128x128xf32>
    %c0_3 = arith.constant 0 : index
    %c0_4 = arith.constant 0 : index
    %2 = vector.load %arg3[%c0_3, %c0_4] : memref<128x128xf32, #tpu.memory_space<vmem>>, vector<128x128xf32>
    %cst = arith.constant dense<0.000000e+00> : vector<8x128xf32>
    %3 = tpu.matmul %0, %1, %cst {dimension_numbers = #tpu.dot_dimension_numbers<[1], [0], [0], [1], [0, 0, 1, 1], [], []>} : vector<8x128xf32>, vector<128x128xf32>, vector<8x128xf32> -> vector<8x128xf32>
    %cst_5 = arith.constant 1.000000e+02 : f32
    %4 = vector.broadcast %cst_5 : f32 to vector<8x128xf32>
    %5 = arith.mulf %3, %4 : vector<8x128xf32>
    %cst_6 = arith.constant dense<0xFF800000> : vector<8xf32>
    %6 = vector.multi_reduction <maximumf>, %5, %cst_6 [1] : vector<8x128xf32> to vector<8xf32>
    %7 = vector.shape_cast %6 : vector<8xf32> to vector<8x1xf32>
    %8 = vector.broadcast %7 : vector<8x1xf32> to vector<8x128xf32>
    %9 = arith.subf %5, %8 : vector<8x128xf32>
    %10 = math.exp %9 : vector<8x128xf32>
    %cst_7 = arith.constant dense<0.000000e+00> : vector<8xf32>
    %11 = vector.multi_reduction <add>, %10, %cst_7 [1] : vector<8x128xf32> to vector<8xf32>
    %12 = vector.shape_cast %11 : vector<8xf32> to vector<8x1xf32>
    %13 = tpu.reciprocal %12 {approx = true} : vector<8x1xf32> -> vector<8x1xf32>
    %14 = vector.broadcast %13 : vector<8x1xf32> to vector<8x128xf32>
    %15 = arith.mulf %10, %14 : vector<8x128xf32>
    %cst_8 = arith.constant dense<0.000000e+00> : vector<8x128xf32>
    %16 = tpu.matmul %15, %2, %cst_8 {dimension_numbers = #tpu.dot_dimension_numbers<[1], [0], [0], [1], [0, 0, 1, 1], [], []>} : vector<8x128xf32>, vector<128x128xf32>, vector<8x128xf32> -> vector<8x128xf32>
    %c0_9 = arith.constant 0 : index
    %c0_10 = arith.constant 0 : index
    %17 = vector.load %arg4[%c0_9, %c0_10] : memref<8x128xf32, #tpu.memory_space<vmem>>, vector<8x128xf32>
    tpu.vector_store %arg4[%c0_9, %c0_10], %16 {strides = array<i32>} : memref<8x128xf32, #tpu.memory_space<vmem>>, vector<8x128xf32>,
    return
  }
  func.func @transform_0(%arg0: i32) -> (i32, i32) {
    %c0_i32 = arith.constant 0 : i32
    %c0_i32_0 = arith.constant 0 : i32
    return %arg0, %c0_i32 : i32, i32
  }
  func.func @transform_1(%arg0: i32) -> (i32, i32) {
    %c0_i32 = arith.constant 0 : i32
    %c0_i32_0 = arith.constant 0 : i32
    %c0_i32_1 = arith.constant 0 : i32
    return %c0_i32, %c0_i32_0 : i32, i32
  }
  func.func @transform_2(%arg0: i32) -> (i32, i32) {
    %c0_i32 = arith.constant 0 : i32
    %c0_i32_0 = arith.constant 0 : i32
    %c0_i32_1 = arith.constant 0 : i32
    return %c0_i32, %c0_i32_0 : i32, i32
  }
  func.func @transform_3(%arg0: i32) -> (i32, i32) {
    %c0_i32 = arith.constant 0 : i32
    %c0_i32_0 = arith.constant 0 : i32
    return %arg0, %c0_i32 : i32, i32
  }
}

</mosaic_0001>

<bundles_post_ra>
// kernel: tpu_custom_call.1
= control target key start
LH: loop header
LB: loop body
LE: loop exit
PB: predicated region body
PF: predicated region fallthrough
CT: control target
= control target key end

     0   :  { %8 = vsyncpa [#allocation3], 0  ;;  %s612_s0 = inlined_call_operand.hbm [shape: f32[8,128], index: 0, kind: input, shape index: {}]   ;;  %s613_s1 = inlined_call_operand.hbm [shape: f32[128,128], index: 1, kind: input, shape index: {}]   ;;  %s614_s2 = inlined_call_operand.hbm [shape: f32[128,128], index: 2, kind: input, shape index: {}]   ;;  %s615_s3 = inlined_call_operand.hbm [shape: f32[8,128], index: 3, kind: output, shape index: {}]  }
   0x1   :  { %9 = vsyncpa [#allocation6], 0 }
   0x2   :  { %10 = vsyncpa [#allocation4], 0  ;;  %s513_s12 = smov [#allocation5]   ;;  %s419_s16 = scalar_lea.hbm %s613_s1, 2048 }
   0x3   :  { %s26_s13 = sshll.u32 %s513_s12, 4  ;;  %p420_p0 = scmp.ne.s32.totalorder %s613_s1, %s419_s16  ;;  %s27_s13 = int_to_ptr.vmem [resolvable:$true] %s26_s13 }
   0x4   :  { %p423_p1 = scmp.lt.u32.totalorder %s419_s16, %s613_s1 }
   0x6   :  { %p425_p2 = pnand %p423_p1, %p420_p0 }
   0x8   :  { %428 = shalt.err (!%p425_p2)
}
   0x9   :  { %s429_s21 = scalar_lea.vmem %s27_s13, 2048  ;;  %p434_p4 = scmp.lt.s32.totalorder %s27_s13, %s27_s13 }
   0xa   :  { %p430_p3 = scmp.ne.s32.totalorder %s27_s13, %s429_s21  ;;  %p435_p5 = scmp.lt.s32.totalorder %s429_s21, %s429_s21 }
   0xc   :  { %p436_p6 = por %p435_p5, %p434_p4 }
   0xe   :  { %p437_p7 = pnand %p436_p6, %p430_p3 }
  0x10   :  { %440 = shalt.err (!%p437_p7)
}
  0x11   :  { %s514_s22 = smov 128   ;;  %s515_s23 = smov 8  }
  0x12   :  { %32 = dma.hbm_to_vmem [thread:$0]  %s613_s1, 2048, %s27_s13, [#allocation6], %s514_s22, %s514_s22, %s515_s23  }
  0x13   :  { %s516_s26 = smov [#allocation2]   ;;  %s517_s28 = smov [#allocation7]  }
  0x14   :  { %s17_s27 = sshll.u32 %s516_s26, 4  ;;  %s38_s29 = sshll.u32 %s517_s28, 4  ;;  %s18_s27 = int_to_ptr.vmem [resolvable:$true] %s17_s27  ;;  %s39_s29 = int_to_ptr.vmem [resolvable:$true] %s38_s29 }
  0x15   :  { %s441_s5 = scalar_lea.hbm %s612_s0, 128 }
  0x16   :  { %p442_p8 = scmp.ne.s32.totalorder %s612_s0, %s441_s5  ;;  %p445_p9 = scmp.lt.u32.totalorder %s441_s5, %s612_s0 }
  0x18   :  { %p447_p10 = pnand %p445_p9, %p442_p8 }
  0x1a   :  { %450 = shalt.err (!%p447_p10)
}
  0x1b   :  { %s451_s1 = scalar_lea.vmem %s18_s27, 128  ;;  %p456_p12 = scmp.lt.s32.totalorder %s18_s27, %s18_s27 }
  0x1c   :  { %p452_p11 = scmp.ne.s32.totalorder %s18_s27, %s451_s1  ;;  %p457_p13 = scmp.lt.s32.totalorder %s451_s1, %s451_s1 }
  0x1e   :  { %p458_p0 = por %p457_p13, %p456_p12 }
  0x20   :  { %p459_p1 = pnand %p458_p0, %p452_p11 }
  0x22   :  { %462 = shalt.err (!%p459_p1)
}
  0x23   :  { %20 = dma.hbm_to_vmem [thread:$0]  %s612_s0, 128, %s18_s27, [#allocation3]  }
  0x24   :  { %s463_s14 = scalar_lea.hbm %s614_s2, 2048 }
  0x25   :  { %p464_p2 = scmp.ne.s32.totalorder %s614_s2, %s463_s14  ;;  %p467_p3 = scmp.lt.u32.totalorder %s463_s14, %s614_s2 }
  0x27   :  { %p469_p4 = pnand %p467_p3, %p464_p2 }
  0x29   :  { %472 = shalt.err (!%p469_p4)
}
  0x2a   :  { %s473_s19 = scalar_lea.vmem %s39_s29, 2048  ;;  %p478_p6 = scmp.lt.s32.totalorder %s39_s29, %s39_s29 }
  0x2b   :  { %p474_p5 = scmp.ne.s32.totalorder %s39_s29, %s473_s19  ;;  %p479_p7 = scmp.lt.s32.totalorder %s473_s19, %s473_s19 }
  0x2d   :  { %p480_p8 = por %p479_p7, %p478_p6 }
  0x2f   :  { %p481_p9 = pnand %p480_p8, %p474_p5 }
  0x31   :  { %484 = shalt.err (!%p481_p9)
}
  0x32   :  { %44 = dma.hbm_to_vmem [thread:$0]  %s614_s2, 2048, %s39_s29, [#allocation6], %s514_s22, %s514_s22, %s515_s23  }
  0x33   :  { %507 = dma.done.wait [#allocation3], 128  }
  0x34   :  { %508 = vsyncadd [#allocation3], 4294967168 }
  0x35   :  { %509 = dma.done.wait [#allocation6], 4096  }
  0x36   :  { %510 = vsyncadd [#allocation6], 4294963200  ;;  %v518_v0 = vmov 0.0|0.0   ;;  %vm519_vm0 = vmmov 0   ;;  %v520_v1 = vmov 0.0   ;;  %v55_v2 = vld [vmem:[#allocation5] sm:$0xff] }
  0x37   :  { %358 = vmatprep.subr.bf16.mxu0 %v518_v0  ;;  %320 = vmatprep.mubr.msk.f32.mxu0 %vm519_vm0, %v520_v1  ;;  %v56_v3 = vld [vmem:[#allocation5 + $0x8] sm:$0xff]  ;;  %v57_v4 = vld [vmem:[#allocation5 + $0x10] sm:$0xff]  ;;  %v58_v6 = vld [vmem:[#allocation5 + $0x18] sm:$0xff]  ;;  %s521_s2 = smov [#allocation8]  }
  0x38   :  { %382 = vmatprep.subr.bf16.mxu1 %v518_v0  ;;  %355 = vmatprep.mubr.msk.f32.mxu1 %vm519_vm0, %v520_v1  ;;  %v359_v5 = vpack.c.bf16 %v56_v3, %v55_v2  ;;  %v362_v7 = vpack.c.bf16 %v58_v6, %v57_v4  ;;  %v59_v8 = vld [vmem:[#allocation5 + $0x20] sm:$0xff]  ;;  %v60_v9 = vld [vmem:[#allocation5 + $0x28] sm:$0xff]  ;;  %v61_v11 = vld [vmem:[#allocation5 + $0x30] sm:$0xff]  ;;  %s244_s21 = sshll.u32 %s521_s2, 4  ;;  %s245_s21 = int_to_ptr.vmem [resolvable:$true] %s244_s21 }
  0x39   :  { %v365_v10 = vpack.c.bf16 %v60_v9, %v59_v8  ;;  %v62_v12 = vld [vmem:[#allocation5 + $0x38] sm:$0xff]  ;;  %v63_v14 = vld [vmem:[#allocation5 + $0x40] sm:$0xff]  ;;  %v64_v15 = vld [vmem:[#allocation5 + $0x48] sm:$0xff]  ;;  %s485_s22 = scalar_lea.vmem %s245_s21, 128  ;;  %p490_p11 = scmp.lt.s32.totalorder %s245_s21, %s245_s21 }
  0x3a   :  { %360 = vmatpush3.bf16.msra.mxu0 %v359_v5  ;;  %v368_v13 = vpack.c.bf16 %v62_v12, %v61_v11  ;;  %v371_v16 = vpack.c.bf16 %v64_v15, %v63_v14  ;;  %v65_v17 = vld [vmem:[#allocation5 + $0x50] sm:$0xff]  ;;  %v66_v18 = vld [vmem:[#allocation5 + $0x58] sm:$0xff]  ;;  %v67_v20 = vld [vmem:[#allocation5 + $0x60] sm:$0xff]  ;;  %p486_p10 = scmp.ne.s32.totalorder %s245_s21, %s485_s22  ;;  %p491_p12 = scmp.lt.s32.totalorder %s485_s22, %s485_s22 }
  0x3b   :  { %361 = vmatprep.subr.bf16.mxu0 %v518_v0  ;;  %v374_v19 = vpack.c.bf16 %v66_v18, %v65_v17  ;;  %v68_v21 = vld [vmem:[#allocation5 + $0x68] sm:$0xff]  ;;  %v69_v23 = vld [vmem:[#allocation5 + $0x70] sm:$0xff]  ;;  %v70_v24 = vld [vmem:[#allocation5 + $0x78] sm:$0xff] }
  0x3c   :  { %v377_v22 = vpack.c.bf16 %v68_v21, %v67_v20  ;;  %v380_v25 = vpack.c.bf16 %v70_v24, %v69_v23  ;;  %v54_v26 = vld [vmem:[#allocation2] sm:$0xff]  ;;  %v71_v30 = vld [vmem:[#allocation7] sm:$0xff]  ;;  %v72_v31 = vld [vmem:[#allocation7 + $0x8] sm:$0xff]  ;;  %p492_p13 = por %p491_p12, %p490_p11 }
  0x3d   :  { %v73_v32 = vld [vmem:[#allocation7 + $0x10] sm:$0xff]  ;;  %v383_v33 = vpack.c.bf16 %v72_v31, %v71_v30  ;;  %v74_v34 = vld [vmem:[#allocation7 + $0x18] sm:$0xff]  ;;  %v75_v36 = vld [vmem:[#allocation7 + $0x20] sm:$0xff] }
  0x3e   :  { %363 = vmatpush3.bf16.msra.mxu0 %v362_v7  ;;  %v386_v35 = vpack.c.bf16 %v74_v34, %v73_v32  ;;  %v76_v37 = vld [vmem:[#allocation7 + $0x28] sm:$0xff]  ;;  %v77_v39 = vld [vmem:[#allocation7 + $0x30] sm:$0xff]  ;;  %v78_v40 = vld [vmem:[#allocation7 + $0x38] sm:$0xff]  ;;  %p493_p0 = pnand %p492_p13, %p486_p10 }
  0x3f   :  { %364 = vmatprep.subr.bf16.mxu0 %v518_v0  ;;  %384 = vmatpush3.bf16.msra.mxu1 %v383_v33  ;;  %v389_v38 = vpack.c.bf16 %v76_v37, %v75_v36  ;;  %v392_v41 = vpack.c.bf16 %v78_v40, %v77_v39  ;;  %v79_v42 = vld [vmem:[#allocation7 + $0x40] sm:$0xff]  ;;  %v80_v43 = vld [vmem:[#allocation7 + $0x48] sm:$0xff]  ;;  %v81_v49 = vld [vmem:[#allocation7 + $0x50] sm:$0xff] }
  0x40   :  { %385 = vmatprep.subr.bf16.mxu1 %v518_v0  ;;  %v395_v44 = vpack.c.bf16 %v80_v43, %v79_v42  ;;  %v82_v50 = vld [vmem:[#allocation7 + $0x58] sm:$0xff]  ;;  %v83_v52 = vld [vmem:[#allocation7 + $0x60] sm:$0xff]  ;;  %v84_v53 = vld [vmem:[#allocation7 + $0x68] sm:$0xff] }
  0x41   :  { %v398_v51 = vpack.c.bf16 %v82_v50, %v81_v49  ;;  %v401_v54 = vpack.c.bf16 %v84_v53, %v83_v52  ;;  %v85_v55 = vld [vmem:[#allocation7 + $0x70] sm:$0xff]  ;;  %v86_v56 = vld [vmem:[#allocation7 + $0x78] sm:$0xff] }
  0x42   :  { %366 = vmatpush3.bf16.msra.mxu0 %v365_v10  ;;  %v404_v57 = vpack.c.bf16 %v86_v56, %v85_v55 }
  0x43   :  { %367 = vmatprep.subr.bf16.mxu0 %v518_v0  ;;  %387 = vmatpush3.bf16.msra.mxu1 %v386_v35 }
  0x44   :  { %388 = vmatprep.subr.bf16.mxu1 %v518_v0 }
  0x46   :  { %369 = vmatpush3.bf16.msra.mxu0 %v368_v13 }
  0x47   :  { %370 = vmatprep.subr.bf16.mxu0 %v518_v0  ;;  %390 = vmatpush3.bf16.msra.mxu1 %v389_v38 }
  0x48   :  { %391 = vmatprep.subr.bf16.mxu1 %v518_v0 }
  0x4a   :  { %372 = vmatpush3.bf16.msra.mxu0 %v371_v16 }
  0x4b   :  { %373 = vmatprep.subr.bf16.mxu0 %v518_v0  ;;  %393 = vmatpush3.bf16.msra.mxu1 %v392_v41 }
  0x4c   :  { %394 = vmatprep.subr.bf16.mxu1 %v518_v0 }
  0x4e   :  { %375 = vmatpush3.bf16.msra.mxu0 %v374_v19 }
  0x4f   :  { %376 = vmatprep.subr.bf16.mxu0 %v518_v0  ;;  %396 = vmatpush3.bf16.msra.mxu1 %v395_v44 }
  0x50   :  { %397 = vmatprep.subr.bf16.mxu1 %v518_v0 }
  0x52   :  { %378 = vmatpush3.bf16.msra.mxu0 %v377_v22 }
  0x53   :  { %379 = vmatprep.subr.bf16.mxu0 %v518_v0  ;;  %399 = vmatpush3.bf16.msra.mxu1 %v398_v51 }
  0x54   :  { %400 = vmatprep.subr.bf16.mxu1 %v518_v0 }
  0x56   :  { %381 = vmatpush3.bf16.msra.mxu0 %v380_v25 }
  0x57   :  { %402 = vmatpush3.bf16.msra.mxu1 %v401_v54 }
  0x58   :  { %403 = vmatprep.subr.bf16.mxu1 %v518_v0 }
  0x59   :  { %321 = vmatmul.mubr.f32.vlgmr.msra.gmra.mrb[0].mxu0 %v54_v26 }
  0x5b   :  { %405 = vmatpush3.bf16.msra.mxu1 %v404_v57 }
 0x12c   :  { %v153_v27 = vpop.f32.mrb[0].mxu0 }
 0x12d   :  { %v157_v28 = vmul.f32 100.0, %v153_v27  ;;  %v322_v29 = vpop.f32.mrb[1].mxu0 }
 0x12f   :  { %158 = vmax.xlane.f32.xlu0 %v157_v28 }
 0x1bc   :  { %v159_v45 = vpop.xlane.xlu0 %158 }
 0x1bd   :  { %v160_v46 = vsub.f32 %v157_v28, %v159_v45 }
 0x1bf   :  { %v161_v47 = vmul.f32 1.442695, %v160_v46 }
 0x1c1   :  { %415 = vpow2.f32 %v161_v47 }
 0x1cb   :  { %v416_v48 = vpop.eup %415 }
 0x1cc   :  { %163 = vadd.xlane.f32.xlu0 %v416_v48 }
 0x259   :  { %v164_v58 = vpop.xlane.xlu0 %163 }
 0x25a   :  { %417 = vrcp.f32 %v164_v58 }
 0x264   :  { %v418_v59 = vpop.eup %417 }
 0x265   :  { %v166_v60 = vmul.f32 %v418_v59, %v416_v48 }
 0x267   :  { %356 = vmatmul.mubr.f32.vlgmr.msra.gmra.mrb[0].mxu1 %v166_v60 }
 0x33a   :  { %v233_v61 = vpop.f32.mrb[0].mxu1 }
 0x33b   :  { %237 = vst [vmem:[#allocation8] sm:$0xff] %v233_v61  ;;  %v357_v62 = vpop.f32.mrb[1].mxu1 }
 0x33c   :  { %496 = shalt.err (!%p493_p0)
}
 0x33d   :  { %s497_s25 = scalar_lea.hbm %s615_s3, 128 }
 0x33e   :  { %p498_p1 = scmp.ne.s32.totalorder %s615_s3, %s497_s25  ;;  %p501_p2 = scmp.lt.u32.totalorder %s497_s25, %s615_s3 }
 0x340   :  { %p503_p3 = pnand %p501_p2, %p498_p1 }
 0x342   :  { %506 = shalt.err (!%p503_p3)
}
 0x343   :  { %247 = dma.vmem_to_hbm [thread:$0]  %s245_s21, 128, %s615_s3, [#allocation4]  }
 0x344   :  { %511 = dma.done.wait [#allocation4], 128  }
 0x345   :  { %512 = vsyncadd [#allocation4], 4294967168 }
 0x346   :  { %251 = vsyncpa [#allocation3], 1 }
 0x347   :  { %252 = vsyncpa [#allocation6], 1 }
 0x348   :  { %253 = vsyncpa [#allocation4], 1 }

</bundles_post_ra>
